<compile_context>
chip_gen: v5e
topology: v5e:2x2
jax: 0.10.0
libtpu: 0.0.40
codegen_flags: <defaults>
</compile_context>

<pallas_src>
from functools import partial

import jax
import jax.numpy as jnp
from jax.experimental import pallas as pl
from jax.experimental.pallas import tpu as pltpu

LANE_C = 384  # lcm(3, 128): multiple of 3 (row alignment) and of 128 (lane dense)


def net_kernel(x_ref, coef_ref, o_ref):
    # x_ref : (TR, C) lane-dense flat view of the (B, 3) input
    # coef_ref: (6, C) rows 0..4 = coefficient patterns for delta = -2..+2,
    #                  row 5   = bias pattern (all functions of lane % 3 only)
    x = x_ref[...]
    c = coef_ref[...]
    C = x.shape[1]
    # out[k] = sum_{delta=-2..2} x[k+delta] * coef_delta[k%3] + bias[k%3]
    # pltpu.roll(x, s)[k] == x[(k - s) mod C]  =>  shift = -delta (mod C).
    # Wrap-around values at logical-row edges always meet a zero coefficient.
    acc = x * c[2:3, :] + c[5:6, :]                    # delta = 0 term + bias
    acc = acc + pltpu.roll(x, 2, 1) * c[0:1, :]        # delta = -2
    acc = acc + pltpu.roll(x, 1, 1) * c[1:2, :]        # delta = -1
    acc = acc + pltpu.roll(x, C - 1, 1) * c[3:4, :]    # delta = +1
    acc = acc + pltpu.roll(x, C - 2, 1) * c[4:5, :]    # delta = +2
    o_ref[...] = acc.astype(o_ref.dtype)


def make_coef_table(params, c_width=LANE_C):
    """One-time algebraic fusion of the three layers into lane-pattern tables."""
    assert c_width % 3 == 0 and c_width % 128 == 0
    w1, b1 = params["w1"], params["b1"]
    w2, b2 = params["w2"], params["b2"]
    w3 = params["w3"]                     # block3 bias exists but is unused in forward
    wf = (w1.T @ w2.T @ w3.T).astype(jnp.float32)         # (in, out) fused weight
    bf = ((b1 @ w2.T + b2) @ w3.T).astype(jnp.float32)    # fused bias (3,)
    zero = jnp.zeros((), jnp.float32)
    reps = c_width // 3
    rows = []
    for d in (-2, -1, 0, 1, 2):
        pat = jnp.stack([wf[j + d, j] if 0 <= j + d < 3 else zero for j in range(3)])
        rows.append(jnp.tile(pat, reps))
    rows.append(jnp.tile(bf, reps))
    return jnp.stack(rows)                                 # (6, c_width) f32


@partial(jax.jit, static_argnames=("tile_rows",))
def net_forward(x, coef, *, tile_rows=2048):
    """x: (B, 3) float32.  coef: (6, LANE_C) from make_coef_table."""
    B, F = x.shape
    C = coef.shape[1]
    N = B * F
    flat = x.reshape(N)                       # zero-copy row-major flatten
    rem = N % C
    if rem:
        # Fallback for B % 128 != 0: pad the flat view up to one lane row.
        # (Costs one extra pass over x; the aligned path below is copy-free.)
        flat = jnp.pad(flat, (0, C - rem))
    R = flat.shape[0] // C
    x2 = flat.reshape(R, C)                   # lane-dense 2-D view

    tr = min(tile_rows, R)                    # multiple of 8, or == R (full dim)
    grid = (pl.cdiv(R, tr),)                  # ragged last block handled by Pallas

    out2 = pl.pallas_call(
        net_kernel,
        out_shape=jax.ShapeDtypeStruct((R, C), jnp.float32),
        grid=grid,
        in_specs=[
            pl.BlockSpec((tr, C), lambda i: (i, 0)),   # dense contiguous DMA
            pl.BlockSpec((6, C), lambda i: (0, 0)),    # params, VMEM-resident
        ],
        out_specs=pl.BlockSpec((tr, C), lambda i: (i, 0)),
        compiler_params=pltpu.CompilerParams(
            dimension_semantics=("parallel",),          # batch-row axis -> dual-TC on v7x
            vmem_limit_bytes=32 * 1024 * 1024,          # ~12 MiB used; safe on v5e/v6e/v7x
        ),
    )(x2, coef)

    out_flat = out2.reshape(R * C)
    if rem:
        out_flat = out_flat[:N]
    return out_flat.reshape(B, F)


def init_params(key):
    """Deterministic init mimicking nn.Linear(3,3) default (uniform +-1/sqrt(3))."""
    bound = 1.0 / jnp.sqrt(3.0)
    ks = jax.random.split(key, 6)
    return {
        "w1": jax.random.uniform(ks[0], (3, 3), jnp.float32, -bound, bound),
        "b1": jax.random.uniform(ks[1], (3,), jnp.float32, -bound, bound),
        "w2": jax.random.uniform(ks[2], (3, 3), jnp.float32, -bound, bound),
        "b2": jax.random.uniform(ks[3], (3,), jnp.float32, -bound, bound),
        "w3": jax.random.uniform(ks[4], (3, 3), jnp.float32, -bound, bound),
        # block3.linear.bias exists in the module but is never used in forward
        "b3": jax.random.uniform(ks[5], (3,), jnp.float32, -bound, bound),
    }


if __name__ == "__main__":
    key = jax.random.PRNGKey(0)
    pkey, xk1, xk2 = jax.random.split(key, 3)
    params = init_params(pkey)
    coef = make_coef_table(params)            # hoisted one-time fusion

    def ref_fn(x):
        h = x @ params["w1"].T + params["b1"]
        h = h @ params["w2"].T + params["b2"]
        return h @ params["w3"].T

    # Fast path: B % 128 == 0 -> zero-copy lane-dense reshape, no padding.
    x1 = jax.random.normal(xk1, (1024, 3), jnp.float32)
    o1 = jax.block_until_ready(net_forward(x1, coef))
    assert o1.shape == (1024, 3)
    assert jnp.allclose(o1, ref_fn(x1), atol=1e-5, rtol=1e-5)

    # Ragged path: misaligned B exercises the tiny-pad fallback.
    x2 = jax.random.normal(xk2, (37, 3), jnp.float32)
    o2 = jax.block_until_ready(net_forward(x2, coef))
    assert o2.shape == (37, 3)
    assert jnp.allclose(o2, ref_fn(x2), atol=1e-5, rtol=1e-5)

    print("KERNEL_OK")
</pallas_src>

<mosaic_0001>
module attributes {stable_mosaic.version = 11 : i64} {
  func.func @net_kernel(%arg0: i32, %arg1: memref<8x384xf32, #tpu.memory_space<vmem>>, %arg2: memref<6x384xf32, #tpu.memory_space<vmem>>, %arg3: memref<8x384xf32, #tpu.memory_space<vmem>>) attributes {dimension_semantics = [#tpu.dimension_semantics<parallel>], iteration_bounds = array<i64: 1>, scalar_prefetch = 0 : i64, scratch_operands = 0 : i64, tpu.core_type = #tpu.core_type<tc>, window_params = [{transform_indices = @transform_0, window_bounds = array<i64: 8, 384>}, {pipeline_mode = #tpu.pipeline_mode<synchronous>, transform_indices = @transform_1, window_bounds = array<i64: 6, 384>}, {transform_indices = @transform_2, window_bounds = array<i64: 8, 384>}]} {
    %c0 = arith.constant 0 : index
    %c0_0 = arith.constant 0 : index
    %0 = vector.load %arg1[%c0, %c0_0] : memref<8x384xf32, #tpu.memory_space<vmem>>, vector<8x384xf32>
    %c0_1 = arith.constant 0 : index
    %c0_2 = arith.constant 0 : index
    %1 = vector.load %arg2[%c0_1, %c0_2] : memref<6x384xf32, #tpu.memory_space<vmem>>, vector<6x384xf32>
    %2 = vector.extract_strided_slice %1 {offsets = [2, 0], sizes = [1, 384], strides = [1, 1]} : vector<6x384xf32> to vector<1x384xf32>
    %3 = vector.broadcast %2 : vector<1x384xf32> to vector<8x384xf32>
    %4 = arith.mulf %0, %3 : vector<8x384xf32>
    %5 = vector.extract_strided_slice %1 {offsets = [5, 0], sizes = [1, 384], strides = [1, 1]} : vector<6x384xf32> to vector<1x384xf32>
    %6 = vector.broadcast %5 : vector<1x384xf32> to vector<8x384xf32>
    %7 = arith.addf %4, %6 : vector<8x384xf32>
    %c2_i32 = arith.constant 2 : i32
    %8 = tpu.dynamic_rotate %0 by %c2_i32 dim 1 : vector<8x384xf32>, i32 -> vector<8x384xf32>
    %9 = vector.extract_strided_slice %1 {offsets = [0, 0], sizes = [1, 384], strides = [1, 1]} : vector<6x384xf32> to vector<1x384xf32>
    %10 = vector.broadcast %9 : vector<1x384xf32> to vector<8x384xf32>
    %11 = arith.mulf %8, %10 : vector<8x384xf32>
    %12 = arith.addf %7, %11 : vector<8x384xf32>
    %c1_i32 = arith.constant 1 : i32
    %13 = tpu.dynamic_rotate %0 by %c1_i32 dim 1 : vector<8x384xf32>, i32 -> vector<8x384xf32>
    %14 = vector.extract_strided_slice %1 {offsets = [1, 0], sizes = [1, 384], strides = [1, 1]} : vector<6x384xf32> to vector<1x384xf32>
    %15 = vector.broadcast %14 : vector<1x384xf32> to vector<8x384xf32>
    %16 = arith.mulf %13, %15 : vector<8x384xf32>
    %17 = arith.addf %12, %16 : vector<8x384xf32>
    %c383_i32 = arith.constant 383 : i32
    %18 = tpu.dynamic_rotate %0 by %c383_i32 dim 1 : vector<8x384xf32>, i32 -> vector<8x384xf32>
    %19 = vector.extract_strided_slice %1 {offsets = [3, 0], sizes = [1, 384], strides = [1, 1]} : vector<6x384xf32> to vector<1x384xf32>
    %20 = vector.broadcast %19 : vector<1x384xf32> to vector<8x384xf32>
    %21 = arith.mulf %18, %20 : vector<8x384xf32>
    %22 = arith.addf %17, %21 : vector<8x384xf32>
    %c382_i32 = arith.constant 382 : i32
    %23 = tpu.dynamic_rotate %0 by %c382_i32 dim 1 : vector<8x384xf32>, i32 -> vector<8x384xf32>
    %24 = vector.extract_strided_slice %1 {offsets = [4, 0], sizes = [1, 384], strides = [1, 1]} : vector<6x384xf32> to vector<1x384xf32>
    %25 = vector.broadcast %24 : vector<1x384xf32> to vector<8x384xf32>
    %26 = arith.mulf %23, %25 : vector<8x384xf32>
    %27 = arith.addf %22, %26 : vector<8x384xf32>
    %c0_3 = arith.constant 0 : index
    %c0_4 = arith.constant 0 : index
    %28 = vector.load %arg3[%c0_3, %c0_4] : memref<8x384xf32, #tpu.memory_space<vmem>>, vector<8x384xf32>
    tpu.vector_store %arg3[%c0_3, %c0_4], %27 {strides = array<i32>} : memref<8x384xf32, #tpu.memory_space<vmem>>, vector<8x384xf32>,
    return
  }
  func.func @transform_0(%arg0: i32) -> (i32, i32) {
    %c0_i32 = arith.constant 0 : i32
    %c0_i32_0 = arith.constant 0 : i32
    return %arg0, %c0_i32 : i32, i32
  }
  func.func @transform_1(%arg0: i32) -> (i32, i32) {
    %c0_i32 = arith.constant 0 : i32
    %c0_i32_0 = arith.constant 0 : i32
    %c0_i32_1 = arith.constant 0 : i32
    return %c0_i32, %c0_i32_0 : i32, i32
  }
  func.func @transform_2(%arg0: i32) -> (i32, i32) {
    %c0_i32 = arith.constant 0 : i32
    %c0_i32_0 = arith.constant 0 : i32
    return %arg0, %c0_i32 : i32, i32
  }
}

</mosaic_0001>

<bundles_post_ra>
// kernel: net_forward.1
= control target key start
LH: loop header
LB: loop body
LE: loop exit
PB: predicated region body
PF: predicated region fallthrough
CT: control target
= control target key end

     0   :  { %s118_s13 = smov 2   ;;  %s119_s16 = smov 1   ;;  %v35_v6 = vlaneseq  ;;  %s206_s0 = inlined_call_operand.vmem [shape: f32[8,384], index: 0, kind: input, shape index: {}]   ;;  %s207_s1 = inlined_call_operand.vmem [shape: f32[6,384], index: 1, kind: input, shape index: {}]   ;;  %s208_s2 = inlined_call_operand.vmem [shape: f32[8,384], index: 2, kind: output, shape index: {}]  }
   0x1   :  { %v13_v0 = vld [vmem:[%s206_s0 + $0x10] sm:$0xff]  ;;  %v11_v1 = vld [vmem:[%s206_s0] sm:$0xff]  ;;  %v12_v2 = vld [vmem:[%s206_s0 + $0x8] sm:$0xff]  ;;  %s120_s17 = smov 127   ;;  %s121_s18 = smov 126  }
   0x2   :  { %33 = vrot.lane.b32.xlu1 %v13_v0, %s118_s13  ;;  %29 = vrot.lane.b32.xlu0 %v11_v1, %s118_s13  ;;  %v149_v7 = vld [vmem:[%s207_s1 + $0x8] sm:$0x3f]  ;;  %v154_v9 = vld [vmem:[%s207_s1] sm:$0x3f]  ;;  %v161_v11 = vand.u32 127, %v35_v6 }
   0x3   :  { %52 = vrot.lane.b32.xlu2 %v12_v2, %s119_s16  ;;  %v159_v10 = vld [vmem:[%s207_s1 + $0x10] sm:$0x3f]  ;;  %v18_v12 = vperm.slane %v149_v7, 2  ;;  %v17_v13 = vperm.slane %v154_v9, 2  ;;  %v23_v17 = vperm.slane %v154_v9, 5  ;;  %v24_v19 = vperm.slane %v149_v7, 5 }
   0x4   :  { %v19_v14 = vperm.slane %v159_v10, 2  ;;  %vm37_vm0 = vcmp.lt.s32.totalorder %v161_v11, 2  ;;  %v42_v20 = vperm.slane %v149_v7, 0  ;;  %v25_v23 = vperm.slane %v159_v10, 5 }
   0x5   :  { %v21_v18 = vmul.f32 %v18_v12, %v12_v2  ;;  %v20_v21 = vmul.f32 %v17_v13, %v11_v1  ;;  %v43_v25 = vperm.slane %v159_v10, 0  ;;  %vm56_vm1 = vcmp.lt.s32.totalorder %v161_v11, 1 }
   0x6   :  { %v22_v22 = vmul.f32 %v19_v14, %v13_v0  ;;  %v62_v27 = vperm.slane %v159_v10, 1  ;;  %v41_v28 = vperm.slane %v154_v9, 0  ;;  %vm75_vm2 = vcmp.lt.s32.totalorder %v161_v11, 127 }
   0x7   :  { %v27_v31 = vadd.f32 %v24_v19, %v21_v18  ;;  %v26_v33 = vadd.f32 %v23_v17, %v20_v21  ;;  %v60_v34 = vperm.slane %v154_v9, 1  ;;  %v61_v35 = vperm.slane %v149_v7, 1 }
   0x8   :  { %v28_v36 = vadd.f32 %v25_v23, %v22_v22  ;;  %v80_v39 = vperm.slane %v149_v7, 3  ;;  %v79_v41 = vperm.slane %v154_v9, 3  ;;  %v81_v48 = vperm.slane %v159_v10, 3 }
   0x9   :  { %vm94_vm3 = vcmp.lt.s32.totalorder %v161_v11, 126  ;;  %v99_v58 = vperm.slane %v149_v7, 4  ;;  %v98_v62 = vperm.slane %v154_v9, 4  ;;  %v100_v63 = vperm.slane %v159_v10, 4 }
   0xa   :  { %50 = vrot.lane.b32.xlu1 %v11_v1, %s119_s16  ;;  %31 = vrot.lane.b32.xlu0 %v12_v2, %s118_s13 }
   0xb   :  { %54 = vrot.lane.b32.xlu2 %v13_v0, %s119_s16 }
  0x12   :  { %71 = vrot.lane.b32.xlu1 %v12_v2, %s120_s17  ;;  %69 = vrot.lane.b32.xlu0 %v11_v1, %s120_s17 }
  0x13   :  { %73 = vrot.lane.b32.xlu2 %v13_v0, %s120_s17 }
  0x1a   :  { %90 = vrot.lane.b32.xlu1 %v12_v2, %s121_s18  ;;  %88 = vrot.lane.b32.xlu0 %v11_v1, %s121_s18 }
  0x1b   :  { %92 = vrot.lane.b32.xlu2 %v13_v0, %s121_s18 }
  0x5d   :  { %v53_v3 = vpop.permute.xlu2 %52 }
  0x65   :  { %v55_v8 = vpop.permute.xlu2 %54 }
  0x66   :  { %v57_v43 = vsel %vm56_vm1, %v53_v3, %v55_v8 }
  0x67   :  { %v65_v52 = vmul.f32 %v62_v27, %v57_v43 }
  0x6d   :  { %v74_v26 = vpop.permute.xlu2 %73 }
  0x74   :  { %v34_v4 = vpop.permute.xlu1 %33  ;;  %v30_v5 = vpop.permute.xlu0 %29 }
  0x75   :  { %v40_v30 = vsel %vm37_vm0, %v34_v4, %v30_v5  ;;  %v93_v61 = vpop.permute.xlu2 %92 }
  0x76   :  { %v44_v44 = vmul.f32 %v41_v28, %v40_v30 }
  0x78   :  { %v47_v56 = vadd.f32 %v44_v44, %v26_v33 }
  0x7c   :  { %v51_v15 = vpop.permute.xlu1 %50  ;;  %v32_v16 = vpop.permute.xlu0 %31 }
  0x7d   :  { %v39_v24 = vsel %vm37_vm0, %v30_v5, %v32_v16  ;;  %v38_v29 = vsel %vm37_vm0, %v32_v16, %v34_v4  ;;  %v59_v37 = vsel %vm56_vm1, %v55_v8, %v51_v15  ;;  %v58_v45 = vsel %vm56_vm1, %v51_v15, %v53_v3 }
  0x7e   :  { %v45_v32 = vmul.f32 %v42_v20, %v39_v24  ;;  %v46_v38 = vmul.f32 %v43_v25, %v38_v29  ;;  %v63_v50 = vmul.f32 %v60_v34, %v59_v37  ;;  %v64_v53 = vmul.f32 %v61_v35, %v58_v45 }
  0x80   :  { %v48_v47 = vadd.f32 %v45_v32, %v27_v31  ;;  %v49_v54 = vadd.f32 %v46_v38, %v28_v36  ;;  %v66_v0 = vadd.f32 %v63_v50, %v47_v56 }
  0x82   :  { %v67_v59 = vadd.f32 %v64_v53, %v48_v47  ;;  %v68_v2 = vadd.f32 %v65_v52, %v49_v54 }
  0x84   :  { %v72_v40 = vpop.permute.xlu1 %71  ;;  %v70_v42 = vpop.permute.xlu0 %69 }
  0x85   :  { %v76_v46 = vsel %vm75_vm2, %v72_v40, %v74_v26  ;;  %v77_v49 = vsel %vm75_vm2, %v70_v42, %v72_v40  ;;  %v78_v51 = vsel %vm75_vm2, %v74_v26, %v70_v42 }
  0x86   :  { %v83_v55 = vmul.f32 %v80_v39, %v76_v46  ;;  %v82_v57 = vmul.f32 %v79_v41, %v77_v49  ;;  %v84_v60 = vmul.f32 %v81_v48, %v78_v51 }
  0x88   :  { %v86_v1 = vadd.f32 %v83_v55, %v67_v59  ;;  %v85_v5 = vadd.f32 %v82_v57, %v66_v0  ;;  %v87_v13 = vadd.f32 %v84_v60, %v68_v2 }
  0x8c   :  { %v91_v3 = vpop.permute.xlu1 %90  ;;  %v89_v4 = vpop.permute.xlu0 %88 }
  0x8d   :  { %v95_v6 = vsel %vm94_vm3, %v91_v3, %v93_v61  ;;  %v96_v8 = vsel %vm94_vm3, %v89_v4, %v91_v3  ;;  %v97_v12 = vsel %vm94_vm3, %v93_v61, %v89_v4 }
  0x8e   :  { %v102_v11 = vmul.f32 %v99_v58, %v95_v6  ;;  %v101_v14 = vmul.f32 %v98_v62, %v96_v8  ;;  %v103_v7 = vmul.f32 %v100_v63, %v97_v12 }
  0x90   :  { %v105_v15 = vadd.f32 %v102_v11, %v86_v1  ;;  %v104_v16 = vadd.f32 %v101_v14, %v85_v5  ;;  %v106_v17 = vadd.f32 %v103_v7, %v87_v13 }
  0x92   :  { %108 = vst [vmem:[%s208_s2 + $0x8] sm:$0xff] %v105_v15 }
  0x93   :  { %107 = vst [vmem:[%s208_s2] sm:$0xff] %v104_v16 }
  0x94   :  { %109 = vst [vmem:[%s208_s2 + $0x10] sm:$0xff] %v106_v17 }

</bundles_post_ra>
